<compile_context>
chip_gen: v5e
topology: v5e:2x2
jax: 0.10.0
libtpu: 0.0.40
codegen_flags: <defaults>
</compile_context>

<pallas_src>
import jax
import jax.numpy as jnp
from jax import lax
from jax.experimental import pallas as pl
from jax.experimental.pallas import tpu as pltpu

OUT_LANES = 128                    # 4 scale positions x GROUP lanes
GROUP = 32                         # lanes per scale position (>= 25 output channels)
PREC = lax.Precision.HIGHEST       # wrapper-side weight folding must stay f32-exact


# ------------------------------ Pallas kernel -------------------------------

def _fade_fused_kernel(x_ref, w_ref, bias_ref, out_ref):
    B, Hp2, W, Cx = x_ref.shape
    H = Hp2 - 2
    L = out_ref.shape[-1]

    xv = x_ref[...]                                   # (B, H+2, W, Cx), one load
    acc = None
    # 3 row shifts: j == de ky == en dy//2 (en weight rows are zero at j == 2).
    for j in range(3):
        slab = xv[:, j:j + H, :, :].reshape(B * H * W, Cx)
        d = jnp.dot(slab, w_ref[j], preferred_element_type=jnp.float32)
        acc = d if acc is None else acc + d
    acc = acc.reshape(B, H, W, L) + bias_ref[...]     # (1,H,W,L) broadcast over B
    out_ref[...] = acc.astype(out_ref.dtype)


# --------------------------- weight reorganization --------------------------

def _build_weights(params, H, W, c_en, c_de):
    """Fold conv1_en / conv1_de / pads / scramble into 3 per-row-shift matrices."""
    w2 = params["w2"].astype(jnp.float32)             # (C, E, 3, 3)
    C, E = w2.shape[0], w2.shape[1]
    G = E // 4

    # en branch: 4 asymmetric pads + channel scramble + 3x3/stride-2 conv is an
    # effective 4x4/stride-2 conv on comp_en:
    #   k_en[q,o,h,w] = sum_{m,dy,dx} asum[o,m,dy,dx] * comp_en[4m+q, 2h-1+dy, 2w-1+dx]
    pads_tl = [(1, 1), (1, 0), (0, 1), (0, 0)]        # (top,left) pad of variant p
    asum = jnp.zeros((C, G, 4, 4), jnp.float32)
    for p, (t, l) in enumerate(pads_tl):
        blk = w2[:, p * G:(p + 1) * G]                # (C, G, 3, 3)
        asum = asum + jnp.pad(blk, ((0, 0), (0, 0), (1 - t, t), (1 - l, l)))

    # Fold conv1_en (linear part) into the 4x4 taps: Wen[q,o,dy,dx,ci].
    w1e = params["w1_en"][:, :, 0, 0].astype(jnp.float32)         # (E, C_en)
    w1e_q = w1e.reshape(G, 4, c_en)                               # [m, q, ci], e = 4m+q
    Wen = jnp.einsum('omyx,mqc->qoyxc', asum, w1e_q, precision=PREC)

    # conv1_en bias through the 4x4 taps, with zero-pad-ring suppression folded in
    # -> spatially varying additive plane (only the 1-pixel border differs).
    b1_q = params["b1_en"].astype(jnp.float32).reshape(G, 4)      # [m, q]
    Bq = jnp.einsum('omyx,mq->qoyx', asum, b1_q, precision=PREC)  # (4, C, 4, 4)
    iy = jnp.ones((H, 4), jnp.float32).at[0, 0].set(0.0).at[H - 1, 3].set(0.0)
    ix = jnp.ones((W, 4), jnp.float32).at[0, 0].set(0.0).at[W - 1, 3].set(0.0)
    bias_en = jnp.einsum('qoyx,hy,wx->hwqo', Bq, iy, ix, precision=PREC)  # (H,W,4,C)

    # de branch: fold conv1_de (bias-free -> exact) into the 3x3 weights.
    w1d = params["w1_de"][:, :, 0, 0].astype(jnp.float32)         # (E, C_de)
    Wde = jnp.einsum('oeyx,ec->oyxc', w2, w1d, precision=PREC)    # (C, 3, 3, C_de)

    # Assemble per-row-shift weights.  x lanes: [en:(dyl,dx,ci) | de:(kx,c)];
    # output lanes: (q, o) with q = scale position, o padded to GROUP.
    KE = 2 * 4 * c_en
    KD = 3 * c_de
    Cx = KE + KD
    en_rows = jnp.transpose(Wen.reshape(4, C, 2, 2, 4, c_en),     # (q,o,jy,dyl,dx,ci)
                            (2, 3, 4, 5, 0, 1)).reshape(2, KE, 4, C)
    de_rows = jnp.transpose(Wde, (1, 2, 3, 0)).reshape(3, KD, C)  # (ky,(kx,c),o)

    w_all = jnp.zeros((3, Cx, 4, GROUP), jnp.float32)
    w_all = w_all.at[0:2, 0:KE, :, 0:C].set(en_rows)              # en: only j in {0,1}
    w_all = w_all.at[:, KE:Cx, :, 0:C].set(                       # de: replicated over q
        jnp.broadcast_to(de_rows[:, :, None, :], (3, KD, 4, C)))
    w_all = w_all.reshape(3, Cx, OUT_LANES)

    # conv2 bias appears in both branches of the reference module -> 2x.
    bias = jnp.zeros((H, W, 4, GROUP), jnp.float32)
    bias = bias.at[:, :, :, 0:C].set(bias_en + 2.0 * params["b2"].astype(jnp.float32))
    return w_all, bias.reshape(1, H, W, OUT_LANES)


# ------------------------------ parameters ---------------------------------

def init_params(key, in_channels_en, in_channels_de, embedding_dim=64, up_kernel_size=5):
    k1, k2, k3, k4 = jax.random.split(key, 4)
    k2sq = up_kernel_size ** 2
    w1_en = jax.random.normal(k1, (embedding_dim, in_channels_en, 1, 1), jnp.float32) * 0.1
    b1_en = jax.random.normal(k2, (embedding_dim,), jnp.float32) * 0.1
    w1_de = jax.random.normal(k3, (embedding_dim, in_channels_de, 1, 1), jnp.float32) * 0.1
    fan_in, fan_out = embedding_dim * 9, k2sq * 9
    std = (2.0 / (fan_in + fan_out)) ** 0.5            # xavier_normal_
    w2 = jax.random.normal(k4, (k2sq, embedding_dim, 3, 3), jnp.float32) * std
    b2 = jnp.zeros((k2sq,), jnp.float32)               # constant_(val=0)
    return dict(w1_en=w1_en, b1_en=b1_en, w1_de=w1_de, w2=w2, b2=b2)


# ------------------------------ forward pass --------------------------------

def semishift_forward(en, de, params, scale=2):
    """SemiShift.forward (scale == 2, as hard-wired by the reference module)."""
    assert scale == 2
    B, c_de, H, W = de.shape
    E = params["w1_en"].shape[0]
    C = params["w2"].shape[0]
    c_en = en.shape[1]
    assert E % 4 == 0 and C <= GROUP
    assert en.shape[2] == 2 * H and en.shape[3] == 2 * W

    # ---- lane-dense input packing (wrapper side, tiny) ----------------------
    # en taps needed: en_pad[2h+dy, 2w+dx] for dy,dx in [0,4) (en_pad = en padded by 1).
    # dy = 2*jy + dyl: dyl and the 4 column taps dx go onto lanes, jy in {0,1}
    # becomes an in-kernel row shift.
    en_l = jnp.transpose(en, (0, 2, 3, 1))                        # (B, 2H, 2W, C_en)
    en_pad = jnp.pad(en_l, ((0, 0), (1, 1), (1, 1), (0, 0)))      # (B, 2H+2, 2W+2, C_en)
    en_r = en_pad.reshape(B, H + 1, 2, 2 * W + 2, c_en)           # [b, u, dyl, x, ci]
    cols = [en_r[:, :, :, dx:dx + 2 * W:2, :] for dx in range(4)]
    en_pack = jnp.stack(cols, axis=4)                             # (B, H+1, 2, W, 4, C_en)
    en_pack = jnp.transpose(en_pack, (0, 1, 3, 2, 4, 5))          # (b, u, w, dyl, dx, ci)
    en_pack = en_pack.reshape(B, H + 1, W, 2 * 4 * c_en)

    # de taps: de_pad[h+ky, w+kx]; kx packed on lanes, ky in {0,1,2} is the same
    # in-kernel row shift the en branch uses (en weight rows are zero at ky == 2).
    de_l = jnp.transpose(de, (0, 2, 3, 1))                        # (B, H, W, C_de)
    de_pad = jnp.pad(de_l, ((0, 0), (1, 1), (1, 1), (0, 0)))      # (B, H+2, W+2, C_de)
    de_pack = jnp.concatenate([de_pad[:, :, kx:kx + W, :] for kx in range(3)],
                              axis=-1)                            # (B, H+2, W, 3*C_de)

    x = jnp.concatenate(
        [jnp.pad(en_pack, ((0, 0), (0, 1), (0, 0), (0, 0))), de_pack], axis=-1)
    Cx = x.shape[-1]                                              # 8*C_en + 3*C_de

    w_all, bias = _build_weights(params, H, W, c_en, c_de)

    ko = pl.pallas_call(
        _fade_fused_kernel,
        out_shape=jax.ShapeDtypeStruct((B, H, W, OUT_LANES), jnp.float32),
        grid=(1,),
        in_specs=[
            pl.BlockSpec((B, H + 2, W, Cx), lambda i: (0, 0, 0, 0)),
            pl.BlockSpec((3, Cx, OUT_LANES), lambda i: (0, 0, 0)),
            pl.BlockSpec((1, H, W, OUT_LANES), lambda i: (0, 0, 0, 0)),
        ],
        out_specs=pl.BlockSpec((B, H, W, OUT_LANES), lambda i: (0, 0, 0, 0)),
        compiler_params=pltpu.CompilerParams(
            dimension_semantics=("arbitrary",),
            vmem_limit_bytes=32 * 1024 * 1024),
    )(x, w_all, bias)

    # lanes = (s1, s2, o); slice to C *before* the pixel-shuffle transpose,
    # then emit NCHW (B, C, 2H, 2W).
    ko = ko.reshape(B, H, W, 2, 2, GROUP)[..., :C]
    out = jnp.transpose(ko, (0, 5, 1, 3, 2, 4)).reshape(B, C, 2 * H, 2 * W)
    return out


# --------------------------- pure-JAX reference -----------------------------

def semishift_ref(en, de, params, scale=2):
    B, _, H, W = de.shape
    E = params["w1_en"].shape[0]
    C = params["w2"].shape[0]
    s2 = scale * scale
    dn = ("NCHW", "OIHW", "NCHW")
    comp_en = lax.conv_general_dilated(en, params["w1_en"], (1, 1), "VALID",
                                       dimension_numbers=dn, precision=PREC)
    comp_en = comp_en + params["b1_en"][None, :, None, None]
    comp_de = lax.conv_general_dilated(de, params["w1_de"], (1, 1), "VALID",
                                       dimension_numbers=dn, precision=PREC)
    pads = [((1, 0), (1, 0)), ((1, 0), (0, 1)), ((0, 1), (1, 0)), ((0, 1), (0, 1))]
    pad_cat = jnp.concatenate(
        [jnp.pad(comp_en, ((0, 0), (0, 0), hp, wp)) for hp, wp in pads], axis=1)
    Hp, Wp = comp_en.shape[2] + 1, comp_en.shape[3] + 1
    x = pad_cat.reshape(B, E, s2, Hp, Wp).transpose(0, 2, 1, 3, 4).reshape(B * s2, E, Hp, Wp)
    k = lax.conv_general_dilated(x, params["w2"], (2, 2), "VALID",
                                 dimension_numbers=dn, precision=PREC)
    k = k + params["b2"][None, :, None, None]
    k = k.reshape(B, s2, C, H, W)
    de_k = lax.conv_general_dilated(comp_de, params["w2"], (1, 1), ((1, 1), (1, 1)),
                                    dimension_numbers=dn, precision=PREC)
    de_k = de_k + params["b2"][None, :, None, None]
    k = k + de_k[:, None]
    k = k.reshape(B, scale, scale, C, H, W)
    return jnp.transpose(k, (0, 3, 4, 1, 5, 2)).reshape(B, C, H * scale, W * scale)


# ---------------------------------- main -------------------------------------

if __name__ == "__main__":
    key = jax.random.PRNGKey(0)
    k_en, k_de, k_p = jax.random.split(key, 3)

    B, C_en, C_de = 2, 4, 8
    H = W = 8
    scale = 2
    embedding_dim = 64
    up_kernel_size = 5

    en = jax.random.normal(k_en, (B, C_en, H * scale, W * scale), jnp.float32)
    de = jax.random.normal(k_de, (B, C_de, H, W), jnp.float32)
    params = init_params(k_p, C_en, C_de, embedding_dim, up_kernel_size)

    out = jax.jit(semishift_forward)(en, de, params)
    out = jax.block_until_ready(out)

    ref = semishift_ref(en, de, params)
    assert out.shape == (B, up_kernel_size ** 2, H * scale, W * scale), out.shape
    err = float(jnp.max(jnp.abs(out - ref)))
    assert err < 1e-3, f"max abs err {err}"

    print("KERNEL_OK")
</pallas_src>

<mosaic_0001>
module attributes {stable_mosaic.version = 11 : i64} {
  func.func @_fade_fused_kernel(%arg0: i32, %arg1: memref<2x10x8x56xf32, #tpu.memory_space<vmem>>, %arg2: memref<3x56x128xf32, #tpu.memory_space<vmem>>, %arg3: memref<1x8x8x128xf32, #tpu.memory_space<vmem>>, %arg4: memref<2x8x8x128xf32, #tpu.memory_space<vmem>>) attributes {dimension_semantics = [#tpu.dimension_semantics<arbitrary>], iteration_bounds = array<i64: 1>, scalar_prefetch = 0 : i64, scratch_operands = 0 : i64, tpu.core_type = #tpu.core_type<tc>, window_params = [{pipeline_mode = #tpu.pipeline_mode<synchronous>, transform_indices = @transform_0, window_bounds = array<i64: 2, 10, 8, 56>}, {pipeline_mode = #tpu.pipeline_mode<synchronous>, transform_indices = @transform_1, window_bounds = array<i64: 3, 56, 128>}, {pipeline_mode = #tpu.pipeline_mode<synchronous>, transform_indices = @transform_2, window_bounds = array<i64: 1, 8, 8, 128>}, {pipeline_mode = #tpu.pipeline_mode<synchronous>, transform_indices = @transform_3, window_bounds = array<i64: 2, 8, 8, 128>}]} {
    %c0 = arith.constant 0 : index
    %c0_0 = arith.constant 0 : index
    %c0_1 = arith.constant 0 : index
    %c0_2 = arith.constant 0 : index
    %0 = vector.load %arg1[%c0, %c0_0, %c0_1, %c0_2] : memref<2x10x8x56xf32, #tpu.memory_space<vmem>>, vector<2x10x8x56xf32>
    %1 = vector.extract_strided_slice %0 {offsets = [0, 0, 0, 0], sizes = [2, 8, 8, 56], strides = [1, 1, 1, 1]} : vector<2x10x8x56xf32> to vector<2x8x8x56xf32>
    %2 = vector.shape_cast %1 : vector<2x8x8x56xf32> to vector<128x56xf32>
    %c0_3 = arith.constant 0 : index
    %c0_4 = arith.constant 0 : index
    %c0_5 = arith.constant 0 : index
    %3 = vector.load %arg2[%c0_3, %c0_4, %c0_5] : memref<3x56x128xf32, #tpu.memory_space<vmem>>, vector<1x56x128xf32>
    %4 = vector.shape_cast %3 : vector<1x56x128xf32> to vector<56x128xf32>
    %cst = arith.constant dense<0.000000e+00> : vector<128x128xf32>
    %5 = tpu.matmul %2, %4, %cst {dimension_numbers = #tpu.dot_dimension_numbers<[1], [0], [0], [1], [0, 0, 1, 1], [], []>} : vector<128x56xf32>, vector<56x128xf32>, vector<128x128xf32> -> vector<128x128xf32>
    %6 = vector.extract_strided_slice %0 {offsets = [0, 1, 0, 0], sizes = [2, 8, 8, 56], strides = [1, 1, 1, 1]} : vector<2x10x8x56xf32> to vector<2x8x8x56xf32>
    %7 = vector.shape_cast %6 : vector<2x8x8x56xf32> to vector<128x56xf32>
    %c1 = arith.constant 1 : index
    %c0_6 = arith.constant 0 : index
    %c0_7 = arith.constant 0 : index
    %8 = vector.load %arg2[%c1, %c0_6, %c0_7] : memref<3x56x128xf32, #tpu.memory_space<vmem>>, vector<1x56x128xf32>
    %9 = vector.shape_cast %8 : vector<1x56x128xf32> to vector<56x128xf32>
    %cst_8 = arith.constant dense<0.000000e+00> : vector<128x128xf32>
    %10 = tpu.matmul %7, %9, %cst_8 {dimension_numbers = #tpu.dot_dimension_numbers<[1], [0], [0], [1], [0, 0, 1, 1], [], []>} : vector<128x56xf32>, vector<56x128xf32>, vector<128x128xf32> -> vector<128x128xf32>
    %11 = arith.addf %5, %10 : vector<128x128xf32>
    %12 = vector.extract_strided_slice %0 {offsets = [0, 2, 0, 0], sizes = [2, 8, 8, 56], strides = [1, 1, 1, 1]} : vector<2x10x8x56xf32> to vector<2x8x8x56xf32>
    %13 = vector.shape_cast %12 : vector<2x8x8x56xf32> to vector<128x56xf32>
    %c2 = arith.constant 2 : index
    %c0_9 = arith.constant 0 : index
    %c0_10 = arith.constant 0 : index
    %14 = vector.load %arg2[%c2, %c0_9, %c0_10] : memref<3x56x128xf32, #tpu.memory_space<vmem>>, vector<1x56x128xf32>
    %15 = vector.shape_cast %14 : vector<1x56x128xf32> to vector<56x128xf32>
    %cst_11 = arith.constant dense<0.000000e+00> : vector<128x128xf32>
    %16 = tpu.matmul %13, %15, %cst_11 {dimension_numbers = #tpu.dot_dimension_numbers<[1], [0], [0], [1], [0, 0, 1, 1], [], []>} : vector<128x56xf32>, vector<56x128xf32>, vector<128x128xf32> -> vector<128x128xf32>
    %17 = arith.addf %11, %16 : vector<128x128xf32>
    %18 = vector.shape_cast %17 : vector<128x128xf32> to vector<2x8x8x128xf32>
    %c0_12 = arith.constant 0 : index
    %c0_13 = arith.constant 0 : index
    %c0_14 = arith.constant 0 : index
    %c0_15 = arith.constant 0 : index
    %19 = vector.load %arg3[%c0_12, %c0_13, %c0_14, %c0_15] : memref<1x8x8x128xf32, #tpu.memory_space<vmem>>, vector<1x8x8x128xf32>
    %20 = vector.broadcast %19 : vector<1x8x8x128xf32> to vector<2x8x8x128xf32>
    %21 = arith.addf %18, %20 : vector<2x8x8x128xf32>
    %c0_16 = arith.constant 0 : index
    %c0_17 = arith.constant 0 : index
    %c0_18 = arith.constant 0 : index
    %c0_19 = arith.constant 0 : index
    %22 = vector.load %arg4[%c0_16, %c0_17, %c0_18, %c0_19] : memref<2x8x8x128xf32, #tpu.memory_space<vmem>>, vector<2x8x8x128xf32>
    tpu.vector_store %arg4[%c0_16, %c0_17, %c0_18, %c0_19], %21 {strides = array<i32>} : memref<2x8x8x128xf32, #tpu.memory_space<vmem>>, vector<2x8x8x128xf32>,
    return
  }
  func.func @transform_0(%arg0: i32) -> (i32, i32, i32, i32) {
    %c0_i32 = arith.constant 0 : i32
    %c0_i32_0 = arith.constant 0 : i32
    %c0_i32_1 = arith.constant 0 : i32
    %c0_i32_2 = arith.constant 0 : i32
    %c0_i32_3 = arith.constant 0 : i32
    return %c0_i32, %c0_i32_0, %c0_i32_1, %c0_i32_2 : i32, i32, i32, i32
  }
  func.func @transform_1(%arg0: i32) -> (i32, i32, i32) {
    %c0_i32 = arith.constant 0 : i32
    %c0_i32_0 = arith.constant 0 : i32
    %c0_i32_1 = arith.constant 0 : i32
    %c0_i32_2 = arith.constant 0 : i32
    return %c0_i32, %c0_i32_0, %c0_i32_1 : i32, i32, i32
  }
  func.func @transform_2(%arg0: i32) -> (i32, i32, i32, i32) {
    %c0_i32 = arith.constant 0 : i32
    %c0_i32_0 = arith.constant 0 : i32
    %c0_i32_1 = arith.constant 0 : i32
    %c0_i32_2 = arith.constant 0 : i32
    %c0_i32_3 = arith.constant 0 : i32
    return %c0_i32, %c0_i32_0, %c0_i32_1, %c0_i32_2 : i32, i32, i32, i32
  }
  func.func @transform_3(%arg0: i32) -> (i32, i32, i32, i32) {
    %c0_i32 = arith.constant 0 : i32
    %c0_i32_0 = arith.constant 0 : i32
    %c0_i32_1 = arith.constant 0 : i32
    %c0_i32_2 = arith.constant 0 : i32
    %c0_i32_3 = arith.constant 0 : i32
    return %c0_i32, %c0_i32_0, %c0_i32_1, %c0_i32_2 : i32, i32, i32, i32
  }
}

</mosaic_0001>

<bundles_post_ra>
// kernel: squeeze.2
= control target key start
LH: loop header
LB: loop body
LE: loop exit
PB: predicated region body
PF: predicated region fallthrough
CT: control target
= control target key end

     0   :  { %s176_s8 = smov 124   ;;  %s177_s9 = smov 108   ;;  %vm7_vm0 = vcmask 31744   ;;  %s331_s0 = inlined_call_operand.vmem [shape: f32[64,4], index: 0, kind: input, shape index: {}]   ;;  %s332_s1 = inlined_call_operand.vmem [shape: f32[16,4,4], index: 1, kind: output, shape index: {}]  }
   0x1   :  { %v4_v0 = vld [vmem:[%s331_s0] sm:$0xf]  ;;  %s175_s0 = smov 116   ;;  %s178_s10 = smov 112  }
   0x2   :  { %5 = vst [vmem:[#allocation0] sm:$0xf] %v4_v0  ;;  %s179_s11 = smov 120   ;;  %s180_s12 = smov 104  }
   0x3   :  { %s181_s13 = smov 96   ;;  %s182_s14 = smov 100  }
   0x4   :  { %s183_s15 = smov 92   ;;  %s184_s16 = smov 84  }
   0x5   :  { %s185_s17 = smov 88   ;;  %s186_s18 = smov 80  }
   0x6   :  { %s187_s19 = smov 72   ;;  %s188_s20 = smov 76  }
   0x7   :  { %s189_s21 = smov 68  }
   0x9   :  { %v26_v1 = vld [vmem:[#allocation0] sm:$0xf]  }
   0xa   :  { %v10_v2 = vld [vmem:[#allocation0] sm:$0xf]   ;;  %27 = vrot.lane.b32.xlu1 %v26_v1, %s175_s0 }
   0xb   :  { %11 = vrot.lane.b32.xlu0 %v10_v2, %s176_s8  ;;  %v42_v3 = vld [vmem:[#allocation0] sm:$0xf]  }
   0xc   :  { %43 = vrot.lane.b32.xlu2 %v42_v3, %s177_s9  ;;  %v34_v4 = vld [vmem:[#allocation0] sm:$0xf]  }
   0xd   :  { %v18_v5 = vld [vmem:[#allocation0] sm:$0xf]  }
   0xe   :  { %v50_v6 = vld [vmem:[#allocation0] sm:$0xf]  }
   0xf   :  { %v66_v7 = vld [vmem:[#allocation0] sm:$0xf]  }
  0x10   :  { %v58_v8 = vld [vmem:[#allocation0] sm:$0xf]  }
  0x11   :  { %v74_v9 = vld [vmem:[#allocation0] sm:$0xf]  }
  0x12   :  { %35 = vrot.lane.b32.xlu1 %v34_v4, %s178_s10  ;;  %v90_v10 = vld [vmem:[#allocation0] sm:$0xf]  }
  0x13   :  { %19 = vrot.lane.b32.xlu0 %v18_v5, %s179_s11  ;;  %v82_v11 = vld [vmem:[#allocation0] sm:$0xf]  }
  0x14   :  { %51 = vrot.lane.b32.xlu2 %v50_v6, %s180_s12  ;;  %v98_v12 = vld [vmem:[#allocation0] sm:$0xf]  }
  0x15   :  { %v114_v13 = vld [vmem:[#allocation0] sm:$0xf]  }
  0x16   :  { %v106_v14 = vld [vmem:[#allocation0] sm:$0xf]  }
  0x17   :  { %v122_v15 = vld [vmem:[#allocation0] sm:$0xf]  }
  0x18   :  { %v6_v22 = vld [vmem:[#allocation0] sm:$0xf]  }
  0x19   :  { %8 = vst.msk [vmem:[%s332_s1] ss:$16 sm:$0x3] %vm7_vm0, %v6_v22  }
  0x1a   :  { %67 = vrot.lane.b32.xlu1 %v66_v7, %s181_s13  ;;  %9 = vst.msk [vmem:[%s332_s1] ss:$16 sm:$0xc] %vm7_vm0, %v6_v22  }
  0x1b   :  { %59 = vrot.lane.b32.xlu0 %v58_v8, %s182_s14 }
  0x1c   :  { %75 = vrot.lane.b32.xlu2 %v74_v9, %s183_s15 }
  0x22   :  { %91 = vrot.lane.b32.xlu1 %v90_v10, %s184_s16 }
  0x23   :  { %83 = vrot.lane.b32.xlu0 %v82_v11, %s185_s17 }
  0x24   :  { %99 = vrot.lane.b32.xlu2 %v98_v12, %s186_s18 }
  0x2a   :  { %115 = vrot.lane.b32.xlu1 %v114_v13, %s187_s19 }
  0x2b   :  { %107 = vrot.lane.b32.xlu0 %v106_v14, %s188_s20 }
  0x2c   :  { %123 = vrot.lane.b32.xlu2 %v122_v15, %s189_s21 }
  0x66   :  { %v44_v16 = vpop.permute.xlu2 %43  }
  0x67   :  { %138 = vst.msk [vmem:[%s332_s1 + $0x5] ss:$16 sm:$0x3] %vm7_vm0, %v44_v16  }
  0x68   :  { %139 = vst.msk [vmem:[%s332_s1 + $0x5] ss:$16 sm:$0xc] %vm7_vm0, %v44_v16  }
  0x6e   :  { %v52_v17 = vpop.permute.xlu2 %51  }
  0x6f   :  { %140 = vst.msk [vmem:[%s332_s1 + $0x6] ss:$16 sm:$0x3] %vm7_vm0, %v52_v17  }
  0x70   :  { %141 = vst.msk [vmem:[%s332_s1 + $0x6] ss:$16 sm:$0xc] %vm7_vm0, %v52_v17  }
  0x76   :  { %v76_v18 = vpop.permute.xlu2 %75  }
  0x77   :  { %146 = vst.msk [vmem:[%s332_s1 + $0x9] ss:$16 sm:$0x3] %vm7_vm0, %v76_v18  }
  0x78   :  { %147 = vst.msk [vmem:[%s332_s1 + $0x9] ss:$16 sm:$0xc] %vm7_vm0, %v76_v18  }
  0x7c   :  { %v28_v19 = vpop.permute.xlu1 %27  }
  0x7d   :  { %v12_v20 = vpop.permute.xlu0 %11   ;;  %134 = vst.msk [vmem:[%s332_s1 + $0x3] ss:$16 sm:$0x3] %vm7_vm0, %v28_v19  }
  0x7e   :  { %135 = vst.msk [vmem:[%s332_s1 + $0x3] ss:$16 sm:$0xc] %vm7_vm0, %v28_v19   ;;  %v100_v21 = vpop.permute.xlu2 %99  }
  0x7f   :  { %130 = vst.msk [vmem:[%s332_s1 + $0x1] ss:$16 sm:$0x3] %vm7_vm0, %v12_v20  }
  0x80   :  { %131 = vst.msk [vmem:[%s332_s1 + $0x1] ss:$16 sm:$0xc] %vm7_vm0, %v12_v20  }
  0x81   :  { %152 = vst.msk [vmem:[%s332_s1 + $0xc] ss:$16 sm:$0x3] %vm7_vm0, %v100_v21  }
  0x82   :  { %153 = vst.msk [vmem:[%s332_s1 + $0xc] ss:$16 sm:$0xc] %vm7_vm0, %v100_v21  }
  0x84   :  { %v36_v23 = vpop.permute.xlu1 %35  }
  0x85   :  { %v20_v24 = vpop.permute.xlu0 %19   ;;  %136 = vst.msk [vmem:[%s332_s1 + $0x4] ss:$16 sm:$0x3] %vm7_vm0, %v36_v23  }
  0x86   :  { %137 = vst.msk [vmem:[%s332_s1 + $0x4] ss:$16 sm:$0xc] %vm7_vm0, %v36_v23   ;;  %v124_v25 = vpop.permute.xlu2 %123  }
  0x87   :  { %132 = vst.msk [vmem:[%s332_s1 + $0x2] ss:$16 sm:$0x3] %vm7_vm0, %v20_v24  }
  0x88   :  { %133 = vst.msk [vmem:[%s332_s1 + $0x2] ss:$16 sm:$0xc] %vm7_vm0, %v20_v24  }
  0x89   :  { %158 = vst.msk [vmem:[%s332_s1 + $0xf] ss:$16 sm:$0x3] %vm7_vm0, %v124_v25  }
  0x8a   :  { %159 = vst.msk [vmem:[%s332_s1 + $0xf] ss:$16 sm:$0xc] %vm7_vm0, %v124_v25  }
  0x8c   :  { %v68_v26 = vpop.permute.xlu1 %67  }
  0x8d   :  { %v60_v27 = vpop.permute.xlu0 %59   ;;  %144 = vst.msk [vmem:[%s332_s1 + $0x8] ss:$16 sm:$0x3] %vm7_vm0, %v68_v26  }
  0x8e   :  { %145 = vst.msk [vmem:[%s332_s1 + $0x8] ss:$16 sm:$0xc] %vm7_vm0, %v68_v26  }
  0x8f   :  { %142 = vst.msk [vmem:[%s332_s1 + $0x7] ss:$16 sm:$0x3] %vm7_vm0, %v60_v27  }
  0x90   :  { %143 = vst.msk [vmem:[%s332_s1 + $0x7] ss:$16 sm:$0xc] %vm7_vm0, %v60_v27  }
  0x94   :  { %v92_v28 = vpop.permute.xlu1 %91  }
  0x95   :  { %v84_v29 = vpop.permute.xlu0 %83   ;;  %150 = vst.msk [vmem:[%s332_s1 + $0xb] ss:$16 sm:$0x3] %vm7_vm0, %v92_v28  }
  0x96   :  { %151 = vst.msk [vmem:[%s332_s1 + $0xb] ss:$16 sm:$0xc] %vm7_vm0, %v92_v28  }
  0x97   :  { %148 = vst.msk [vmem:[%s332_s1 + $0xa] ss:$16 sm:$0x3] %vm7_vm0, %v84_v29  }
  0x98   :  { %149 = vst.msk [vmem:[%s332_s1 + $0xa] ss:$16 sm:$0xc] %vm7_vm0, %v84_v29  }
  0x9c   :  { %v116_v30 = vpop.permute.xlu1 %115  }
  0x9d   :  { %v108_v31 = vpop.permute.xlu0 %107   ;;  %156 = vst.msk [vmem:[%s332_s1 + $0xe] ss:$16 sm:$0x3] %vm7_vm0, %v116_v30  }
  0x9e   :  { %157 = vst.msk [vmem:[%s332_s1 + $0xe] ss:$16 sm:$0xc] %vm7_vm0, %v116_v30  }
  0x9f   :  { %154 = vst.msk [vmem:[%s332_s1 + $0xd] ss:$16 sm:$0x3] %vm7_vm0, %v108_v31  }
  0xa0   :  { %155 = vst.msk [vmem:[%s332_s1 + $0xd] ss:$16 sm:$0xc] %vm7_vm0, %v108_v31  }

// kernel: semishift_forward.1
= control target key start
LH: loop header
LB: loop body
LE: loop exit
PB: predicated region body
PF: predicated region fallthrough
CT: control target
= control target key end

     0   :  { %vm49_vm0 = vcmask 457728   ;;  %s768_s1 = inlined_call_operand.vmem [shape: f32[3,56,128], index: 1, kind: input, shape index: {}]   ;;  %s769_s0 = inlined_call_operand.vmem [shape: f32[2,10,8,56], index: 0, kind: input, shape index: {}]   ;;  %s770_s2 = inlined_call_operand.vmem [shape: f32[1,8,8,128], index: 2, kind: input, shape index: {}]   ;;  %s771_s3 = inlined_call_operand.vmem [shape: f32[2,8,8,128], index: 3, kind: output, shape index: {}]  }
   0x1   :  { %v379_v0 = vld [vmem:[%s768_s1 + $0x68] sm:$0xff]  ;;  %v482_v1 = vld [vmem:[%s768_s1 + $0xa0] sm:$0xff]  ;;  %v491_v3 = vld [vmem:[%s768_s1 + $0x98] sm:$0xff] }
   0x2   :  { %v378_v2 = vld [vmem:[%s768_s1 + $0x60] sm:$0xff]  ;;  %435 = vmatpush.msra.mxu3 %v379_v0  ;;  %257 = vmatpush.msra.mxu2 %v482_v1  ;;  %v40_v4 = vld [vmem:[%s768_s1 + $0x30] sm:$0xff]  ;;  %v377_v5 = vld [vmem:[%s768_s1 + $0x58] sm:$0xff] }
   0x3   :  { %107 = vmatpush.msra.mxu0 %v379_v0  ;;  %178 = vmatpush.msra.mxu1 %v40_v4  ;;  %v502_v6 = vld [vmem:[%s768_s1 + $0x90] sm:$0xff]  ;;  %v39_v7 = vld [vmem:[%s768_s1 + $0x28] sm:$0xff]  ;;  %v38_v8 = vld [vmem:[%s768_s1 + $0x20] sm:$0xff] }
   0x4   :  { %436 = vmatpush.msra.mxu3 %v378_v2  ;;  %258 = vmatpush.msra.mxu2 %v491_v3  ;;  %v376_v9 = vld [vmem:[%s768_s1 + $0x50] sm:$0xff]  ;;  %v517_v10 = vld [vmem:[%s768_s1 + $0x88] sm:$0xff]  ;;  %v37_v11 = vld [vmem:[%s768_s1 + $0x18] sm:$0xff] }
   0x5   :  { %108 = vmatpush.msra.mxu0 %v378_v2  ;;  %179 = vmatpush.msra.mxu1 %v39_v7  ;;  %v375_v12 = vld [vmem:[%s768_s1 + $0x48] sm:$0xff]  ;;  %v414_v13 = vld [vmem:[%s768_s1 + $0x80] sm:$0xff]  ;;  %v36_v14 = vld [vmem:[%s768_s1 + $0x10] sm:$0xff] }
   0x6   :  { %437 = vmatpush.msra.mxu3 %v377_v5  ;;  %259 = vmatpush.msra.mxu2 %v502_v6  ;;  %v374_v15 = vld [vmem:[%s768_s1 + $0x40] sm:$0xff]  ;;  %v413_v16 = vld [vmem:[%s768_s1 + $0x78] sm:$0xff]  ;;  %v35_v17 = vld [vmem:[%s768_s1 + $0x8] sm:$0xff] }
   0x7   :  { %109 = vmatpush.msra.mxu0 %v377_v5  ;;  %180 = vmatpush.msra.mxu1 %v38_v8  ;;  %v373_v18 = vld [vmem:[%s768_s1 + $0x38] sm:$0xff]  ;;  %v412_v19 = vld [vmem:[%s768_s1 + $0x70] sm:$0xff]  ;;  %v34_v22 = vld [vmem:[%s768_s1] sm:$0xff] }
   0x8   :  { %438 = vmatpush.msra.mxu3 %v376_v9  ;;  %260 = vmatpush.msra.mxu2 %v517_v10  ;;  %v551_v20 = vld [vmem:[%s769_s0 + $0x78] sm:$0xff]  ;;  %v16_v21 = vld [vmem:[%s769_s0 + $0x10] sm:$0xff]  ;;  %v15_v23 = vld [vmem:[%s769_s0 + $0x8] sm:$0xff] }
   0x9   :  { %110 = vmatpush.msra.mxu0 %v376_v9  ;;  %181 = vmatpush.msra.mxu1 %v37_v11  ;;  %v14_v24 = vld [vmem:[%s769_s0] sm:$0xff]  ;;  %v17_v26 = vld [vmem:[%s769_s0 + $0x18] sm:$0xff]  ;;  %v31_v27 = vld [vmem:[%s769_s0 + $0x88] sm:$0xff] }
   0xa   :  { %439 = vmatpush.msra.mxu3 %v375_v12  ;;  %261 = vmatpush.msra.mxu2 %v414_v13  ;;  %v30_v25 = vld [vmem:[%s769_s0 + $0x80] sm:$0xff]  ;;  %v32_v29 = vld [vmem:[%s769_s0 + $0x90] sm:$0xff]  ;;  %v19_v30 = vld [vmem:[%s769_s0 + $0x28] sm:$0xff] }
   0xb   :  { %111 = vmatpush.msra.mxu0 %v375_v12  ;;  %182 = vmatpush.msra.mxu1 %v36_v14  ;;  %v18_v28 = vld [vmem:[%s769_s0 + $0x20] sm:$0xff]  ;;  %v28_v31 = vld [vmem:[%s769_s0 + $0x70] sm:$0xff]  ;;  %v21_v33 = vld [vmem:[%s769_s0 + $0x38] sm:$0xff] }
   0xc   :  { %440 = vmatpush.msra.mxu3 %v374_v15  ;;  %262 = vmatpush.msra.mxu2 %v413_v16  ;;  %v20_v32 = vld [vmem:[%s769_s0 + $0x30] sm:$0xff]  ;;  %v22_v34 = vld [vmem:[%s769_s0 + $0x40] sm:$0xff]  ;;  %v23_v35 = vld [vmem:[%s769_s0 + $0x48] sm:$0xff] }
   0xd   :  { %112 = vmatpush.msra.mxu0 %v374_v15  ;;  %183 = vmatpush.msra.mxu1 %v35_v17  ;;  %v26_v36 = vld [vmem:[%s769_s0 + $0x60] sm:$0xff]  ;;  %v25_v37 = vld [vmem:[%s769_s0 + $0x58] sm:$0xff]  ;;  %v24_v38 = vld [vmem:[%s769_s0 + $0x50] sm:$0xff] }
   0xe   :  { %441 = vmatpush.msra.mxu3 %v373_v18  ;;  %263 = vmatpush.msra.mxu2 %v412_v19  ;;  %v27_v39 = vld [vmem:[%s769_s0 + $0x68] sm:$0xff]  ;;  %v33_v40 = vld [vmem:[%s769_s0 + $0x98] sm:$0xff]  ;;  %v673_v46 = vld [vmem:[%s770_s2] sm:$0xff] }
   0xf   :  { %392 = vmatmul.msk.f32.vlgmr.msra.gmra.mxu3 %vm49_vm0, %v551_v20  ;;  %419 = vmatmul.msk.f32.vlgmr.msra.gmra.mxu2 %vm49_vm0, %v16_v21  ;;  %v684_v54 = vld [vmem:[%s770_s2 + $0x8] sm:$0xff]  ;;  %v695_v62 = vld [vmem:[%s770_s2 + $0x10] sm:$0xff] }
  0x10   :  { %442 = vmatpush.msrb.mxu3 %v40_v4  ;;  %113 = vmatpush.msra.mxu0 %v373_v18 }
  0x11   :  { %184 = vmatpush.msra.mxu1 %v34_v22  ;;  %380 = vmatmul.msk.f32.vlgmr.msra.gmra.mxu0 %vm49_vm0, %v15_v23 }
  0x12   :  { %396 = vmatmul.msk.f32.vlgmr.msra.gmra.mxu1 %vm49_vm0, %v14_v24  ;;  %443 = vmatpush.msrb.mxu3 %v39_v7 }
  0x14   :  { %444 = vmatpush.msrb.mxu3 %v38_v8 }
  0x16   :  { %445 = vmatpush.msrb.mxu3 %v37_v11 }
  0x17   :  { %393 = vmatmul.msk.f32.gmra.mxu3 %vm49_vm0, %v30_v25  ;;  %420 = vmatmul.msk.f32.gmra.mxu2 %vm49_vm0, %v17_v26 }
  0x18   :  { %446 = vmatpush.msrb.mxu3 %v36_v14  ;;  %v333_v14 = vld [vmem:[%s770_s2 + $0x20] sm:$0xff] }
  0x19   :  { %381 = vmatmul.msk.f32.gmra.mxu0 %vm49_vm0, %v16_v21 }
  0x1a   :  { %397 = vmatmul.msk.f32.gmra.mxu1 %vm49_vm0, %v15_v23  ;;  %447 = vmatpush.msrb.mxu3 %v35_v17 }
  0x1c   :  { %448 = vmatpush.msrb.mxu3 %v34_v22  ;;  %v334_v22 = vld [vmem:[%s770_s2 + $0x28] sm:$0xff] }
  0x1e   :  { %449 = vmatpush.msra.mxu3 %v482_v1 }
  0x1f   :  { %394 = vmatmul.msk.f32.gmra.mxu3 %vm49_vm0, %v31_v27  ;;  %421 = vmatmul.msk.f32.gmra.mxu2 %vm49_vm0, %v18_v28 }
  0x20   :  { %450 = vmatpush.msra.mxu3 %v491_v3 }
  0x21   :  { %382 = vmatmul.msk.f32.gmra.mxu0 %vm49_vm0, %v17_v26 }
  0x22   :  { %398 = vmatmul.msk.f32.gmra.mxu1 %vm49_vm0, %v16_v21  ;;  %451 = vmatpush.msra.mxu3 %v502_v6  ;;  %v706_v6 = vld [vmem:[%s770_s2 + $0x18] sm:$0xff] }
  0x24   :  { %452 = vmatpush.msra.mxu3 %v517_v10 }
  0x26   :  { %453 = vmatpush.msra.mxu3 %v414_v13 }
  0x27   :  { %395 = vmatmul.msk.f32.gmra.mxu3 %vm49_vm0, %v32_v29  ;;  %422 = vmatmul.msk.f32.gmra.mxu2 %vm49_vm0, %v19_v30 }
  0x28   :  { %454 = vmatpush.msra.mxu3 %v413_v16 }
  0x29   :  { %383 = vmatmul.msk.f32.gmra.mxu0 %vm49_vm0, %v18_v28 }
  0x2a   :  { %399 = vmatmul.msk.f32.gmra.mxu1 %vm49_vm0, %v17_v26  ;;  %455 = vmatpush.msra.mxu3 %v412_v19 }
  0x2f   :  { %408 = vmatmul.msk.f32.vlgmr.msrb.gmra.mxu3 %vm49_vm0, %v28_v31  ;;  %423 = vmatmul.msk.f32.gmra.mxu2 %vm49_vm0, %v20_v32 }
  0x31   :  { %384 = vmatmul.msk.f32.gmra.mxu0 %vm49_vm0, %v19_v30 }
  0x32   :  { %400 = vmatmul.msk.f32.gmra.mxu1 %vm49_vm0, %v18_v28 }
  0x37   :  { %409 = vmatmul.msk.f32.gmra.mxu3 %vm49_vm0, %v551_v20  ;;  %424 = vmatmul.msk.f32.gmra.mxu2 %vm49_vm0, %v21_v33 }
  0x39   :  { %385 = vmatmul.msk.f32.gmra.mxu0 %vm49_vm0, %v20_v32 }
  0x3a   :  { %401 = vmatmul.msk.f32.gmra.mxu1 %vm49_vm0, %v19_v30  ;;  %v335_v30 = vld [vmem:[%s770_s2 + $0x30] sm:$0xff] }
  0x3f   :  { %410 = vmatmul.msk.f32.gmra.mxu3 %vm49_vm0, %v30_v25  ;;  %425 = vmatmul.msk.f32.gmra.mxu2 %vm49_vm0, %v22_v34 }
  0x41   :  { %386 = vmatmul.msk.f32.gmra.mxu0 %vm49_vm0, %v21_v33 }
  0x42   :  { %402 = vmatmul.msk.f32.gmra.mxu1 %vm49_vm0, %v20_v32 }
  0x47   :  { %411 = vmatmul.msk.f32.gmra.mxu3 %vm49_vm0, %v31_v27  ;;  %426 = vmatmul.msk.f32.gmra.mxu2 %vm49_vm0, %v23_v35 }
  0x49   :  { %387 = vmatmul.msk.f32.gmra.mxu0 %vm49_vm0, %v22_v34 }
  0x4a   :  { %403 = vmatmul.msk.f32.gmra.mxu1 %vm49_vm0, %v21_v33 }
  0x4f   :  { %427 = vmatmul.msk.f32.gmra.mxu2 %vm49_vm0, %v26_v36  ;;  %431 = vmatmul.msk.f32.vlgmr.msra.gmra.mxu3 %vm49_vm0, %v30_v25 }
  0x51   :  { %388 = vmatmul.msk.f32.gmra.mxu0 %vm49_vm0, %v25_v37 }
  0x52   :  { %404 = vmatmul.msk.f32.gmra.mxu1 %vm49_vm0, %v24_v38  ;;  %v336_v38 = vld [vmem:[%s770_s2 + $0x38] sm:$0xff] }
  0x57   :  { %428 = vmatmul.msk.f32.gmra.mxu2 %vm49_vm0, %v27_v39  ;;  %432 = vmatmul.msk.f32.gmra.mxu3 %vm49_vm0, %v31_v27 }
  0x59   :  { %389 = vmatmul.msk.f32.gmra.mxu0 %vm49_vm0, %v26_v36 }
  0x5a   :  { %405 = vmatmul.msk.f32.gmra.mxu1 %vm49_vm0, %v25_v37 }
  0x5f   :  { %429 = vmatmul.msk.f32.gmra.mxu2 %vm49_vm0, %v28_v31  ;;  %433 = vmatmul.msk.f32.gmra.mxu3 %vm49_vm0, %v32_v29 }
  0x61   :  { %390 = vmatmul.msk.f32.gmra.mxu0 %vm49_vm0, %v27_v39 }
  0x62   :  { %406 = vmatmul.msk.f32.gmra.mxu1 %vm49_vm0, %v26_v36 }
  0x67   :  { %430 = vmatmul.msk.f32.gmra.mxu2 %vm49_vm0, %v551_v20  ;;  %434 = vmatmul.msk.f32.gmra.mxu3 %vm49_vm0, %v33_v40 }
  0x69   :  { %391 = vmatmul.msk.f32.gmra.mxu0 %vm49_vm0, %v28_v31 }
  0x6a   :  { %407 = vmatmul.msk.f32.gmra.mxu1 %vm49_vm0, %v27_v39 }
  0x8e   :  { %v115_v41 = vpop.f32.mrf.mxu0 }
  0x8f   :  { %v186_v42 = vpop.f32.mrf.mxu1 }
  0x90   :  { %v187_v43 = vadd.f32 %v186_v42, %v115_v41 }
  0x92   :  { %v668_v44 = vpop.f32.mrf.mxu3  ;;  %v265_v45 = vpop.f32.mrf.mxu2 }
  0x93   :  { %v313_v47 = vadd.f32 %v265_v45, %v187_v43 }
  0x95   :  { %v337_v48 = vadd.f32 %v673_v46, %v313_v47 }
  0x96   :  { %v118_v49 = vpop.f32.mrf.mxu0 }
  0x97   :  { %353 = vst [vmem:[%s771_s3] sm:$0xff] %v337_v48  ;;  %v189_v50 = vpop.f32.mrf.mxu1 }
  0x98   :  { %v190_v51 = vadd.f32 %v189_v50, %v118_v49 }
  0x9a   :  { %v679_v52 = vpop.f32.mrf.mxu3  ;;  %v268_v53 = vpop.f32.mrf.mxu2 }
  0x9b   :  { %v314_v55 = vadd.f32 %v268_v53, %v190_v51 }
  0x9d   :  { %v338_v56 = vadd.f32 %v684_v54, %v314_v55 }
  0x9e   :  { %v121_v57 = vpop.f32.mrf.mxu0 }
  0x9f   :  { %354 = vst [vmem:[%s771_s3 + $0x8] sm:$0xff] %v338_v56  ;;  %v192_v58 = vpop.f32.mrf.mxu1 }
  0xa0   :  { %v193_v59 = vadd.f32 %v192_v58, %v121_v57 }
  0xa2   :  { %v690_v60 = vpop.f32.mrf.mxu3  ;;  %v271_v61 = vpop.f32.mrf.mxu2 }
  0xa3   :  { %v315_v63 = vadd.f32 %v271_v61, %v193_v59 }
  0xa5   :  { %v339_v0 = vadd.f32 %v695_v62, %v315_v63 }
  0xa6   :  { %v124_v1 = vpop.f32.mrf.mxu0 }
  0xa7   :  { %355 = vst [vmem:[%s771_s3 + $0x10] sm:$0xff] %v339_v0  ;;  %v195_v2 = vpop.f32.mrf.mxu1 }
  0xa8   :  { %v196_v3 = vadd.f32 %v195_v2, %v124_v1 }
  0xaa   :  { %v701_v4 = vpop.f32.mrf.mxu3  ;;  %v274_v5 = vpop.f32.mrf.mxu2 }
  0xab   :  { %v316_v7 = vadd.f32 %v274_v5, %v196_v3 }
  0xad   :  { %v340_v8 = vadd.f32 %v706_v6, %v316_v7 }
  0xae   :  { %v127_v9 = vpop.f32.mrf.mxu0 }
  0xaf   :  { %356 = vst [vmem:[%s771_s3 + $0x18] sm:$0xff] %v340_v8  ;;  %v198_v10 = vpop.f32.mrf.mxu1 }
  0xb0   :  { %v199_v11 = vadd.f32 %v198_v10, %v127_v9 }
  0xb2   :  { %v222_v12 = vpop.f32.mrf.mxu3  ;;  %v277_v13 = vpop.f32.mrf.mxu2 }
  0xb3   :  { %v317_v15 = vadd.f32 %v277_v13, %v199_v11  ;;  %v223_v45 = vadd.f32 %v222_v12, %v668_v44 }
  0xb5   :  { %v341_v16 = vadd.f32 %v333_v14, %v317_v15 }
  0xb6   :  { %v130_v17 = vpop.f32.mrf.mxu0 }
  0xb7   :  { %357 = vst [vmem:[%s771_s3 + $0x20] sm:$0xff] %v341_v16  ;;  %v201_v18 = vpop.f32.mrf.mxu1 }
  0xb8   :  { %v202_v19 = vadd.f32 %v201_v18, %v130_v17 }
  0xba   :  { %v225_v20 = vpop.f32.mrf.mxu3  ;;  %v280_v21 = vpop.f32.mrf.mxu2 }
  0xbb   :  { %v318_v23 = vadd.f32 %v280_v21, %v202_v19  ;;  %v226_v44 = vadd.f32 %v225_v20, %v679_v52 }
  0xbd   :  { %v342_v24 = vadd.f32 %v334_v22, %v318_v23 }
  0xbe   :  { %v133_v25 = vpop.f32.mrf.mxu0 }
  0xbf   :  { %358 = vst [vmem:[%s771_s3 + $0x28] sm:$0xff] %v342_v24  ;;  %v204_v26 = vpop.f32.mrf.mxu1 }
  0xc0   :  { %v205_v27 = vadd.f32 %v204_v26, %v133_v25 }
  0xc2   :  { %v228_v28 = vpop.f32.mrf.mxu3  ;;  %v283_v29 = vpop.f32.mrf.mxu2 }
  0xc3   :  { %v319_v31 = vadd.f32 %v283_v29, %v205_v27  ;;  %v229_v52 = vadd.f32 %v228_v28, %v690_v60 }
  0xc5   :  { %v343_v32 = vadd.f32 %v335_v30, %v319_v31 }
  0xc6   :  { %v136_v33 = vpop.f32.mrf.mxu0 }
  0xc7   :  { %359 = vst [vmem:[%s771_s3 + $0x30] sm:$0xff] %v343_v32  ;;  %v207_v34 = vpop.f32.mrf.mxu1 }
  0xc8   :  { %v208_v35 = vadd.f32 %v207_v34, %v136_v33 }
  0xca   :  { %v231_v36 = vpop.f32.mrf.mxu3  ;;  %v286_v37 = vpop.f32.mrf.mxu2 }
  0xcb   :  { %v320_v39 = vadd.f32 %v286_v37, %v208_v35  ;;  %v232_v60 = vadd.f32 %v231_v36, %v701_v4 }
  0xcd   :  { %v344_v40 = vadd.f32 %v336_v38, %v320_v39 }
  0xce   :  { %v139_v41 = vpop.f32.mrf.mxu0 }
  0xcf   :  { %360 = vst [vmem:[%s771_s3 + $0x38] sm:$0xff] %v344_v40  ;;  %v210_v42 = vpop.f32.mrf.mxu1 }
  0xd0   :  { %v211_v43 = vadd.f32 %v210_v42, %v139_v41 }
  0xd2   :  { %v289_v47 = vpop.f32.mrf.mxu2  ;;  %v301_v48 = vpop.f32.mrf.mxu3 }
  0xd3   :  { %v321_v49 = vadd.f32 %v289_v47, %v211_v43  ;;  %v325_v50 = vadd.f32 %v301_v48, %v223_v45 }
  0xd5   :  { %v345_v51 = vadd.f32 %v673_v46, %v321_v49  ;;  %v349_v53 = vadd.f32 %v333_v14, %v325_v50 }
  0xd6   :  { %v142_v55 = vpop.f32.mrf.mxu0 }
  0xd7   :  { %361 = vst [vmem:[%s771_s3 + $0x40] sm:$0xff] %v345_v51  ;;  %v213_v56 = vpop.f32.mrf.mxu1 }
  0xd8   :  { %365 = vst [vmem:[%s771_s3 + $0x60] sm:$0xff] %v349_v53  ;;  %v214_v57 = vadd.f32 %v213_v56, %v142_v55 }
  0xda   :  { %v292_v58 = vpop.f32.mrf.mxu2  ;;  %v304_v59 = vpop.f32.mrf.mxu3 }
  0xdb   :  { %v322_v61 = vadd.f32 %v292_v58, %v214_v57  ;;  %v326_v63 = vadd.f32 %v304_v59, %v226_v44 }
  0xdd   :  { %v346_v46 = vadd.f32 %v684_v54, %v322_v61  ;;  %v350_v0 = vadd.f32 %v334_v22, %v326_v63 }
  0xde   :  { %v145_v1 = vpop.f32.mrf.mxu0 }
  0xdf   :  { %362 = vst [vmem:[%s771_s3 + $0x48] sm:$0xff] %v346_v46  ;;  %v216_v2 = vpop.f32.mrf.mxu1 }
  0xe0   :  { %366 = vst [vmem:[%s771_s3 + $0x68] sm:$0xff] %v350_v0  ;;  %v217_v3 = vadd.f32 %v216_v2, %v145_v1 }
  0xe2   :  { %v295_v5 = vpop.f32.mrf.mxu2  ;;  %v307_v7 = vpop.f32.mrf.mxu3 }
  0xe3   :  { %v323_v8 = vadd.f32 %v295_v5, %v217_v3  ;;  %v327_v9 = vadd.f32 %v307_v7, %v229_v52 }
  0xe5   :  { %v347_v54 = vadd.f32 %v695_v62, %v323_v8  ;;  %v351_v10 = vadd.f32 %v335_v30, %v327_v9 }
  0xe6   :  { %v148_v11 = vpop.f32.mrf.mxu0 }
  0xe7   :  { %363 = vst [vmem:[%s771_s3 + $0x50] sm:$0xff] %v347_v54  ;;  %v219_v12 = vpop.f32.mrf.mxu1 }
  0xe8   :  { %367 = vst [vmem:[%s771_s3 + $0x70] sm:$0xff] %v351_v10  ;;  %v220_v13 = vadd.f32 %v219_v12, %v148_v11 }
  0xea   :  { %v298_v14 = vpop.f32.mrf.mxu2  ;;  %v310_v15 = vpop.f32.mrf.mxu3 }
  0xeb   :  { %v324_v16 = vadd.f32 %v298_v14, %v220_v13  ;;  %v328_v17 = vadd.f32 %v310_v15, %v232_v60 }
  0xed   :  { %v348_v62 = vadd.f32 %v706_v6, %v324_v16  ;;  %v352_v18 = vadd.f32 %v336_v38, %v328_v17 }
  0xef   :  { %364 = vst [vmem:[%s771_s3 + $0x58] sm:$0xff] %v348_v62 }
  0xf0   :  { %368 = vst [vmem:[%s771_s3 + $0x78] sm:$0xff] %v352_v18 }

</bundles_post_ra>
